<compile_context>
chip_gen: v5e
topology: v5e:2x2
jax: 0.10.0
libtpu: 0.0.40
codegen_flags: <defaults>
</compile_context>

<pallas_src>
import jax
import jax.numpy as jnp
from jax.experimental import pallas as pl
from jax.experimental.pallas import tpu as pltpu


def _round_up(n, m):
    return ((n + m - 1) // m) * m


def mlp_kernel(x_ref, w1_ref, b1_ref, w2_ref, b2_ref, o_ref):
    # fc1 on the MXU, f32 accumulation.
    h = jnp.dot(x_ref[...], w1_ref[...], preferred_element_type=jnp.float32)
    # bias + ReLU in f32 on the VPU.
    h = jnp.maximum(h + b1_ref[...], 0.0)
    # fc2 as (1, H) @ (tb, H)^T on the MXU (q @ k^T style NT matmul).  The
    # result is already lane-major, so the store below is a few unmasked
    # full-lane vst instead of tb/8 masked single-lane column stores.
    out_row = jax.lax.dot_general(
        w2_ref[...], h,
        dimension_numbers=(((1,), (1,)), ((), ())),
        preferred_element_type=jnp.float32)            # (1, tb)
    o_ref[...] = (out_row + b2_ref[0, 0]).astype(o_ref.dtype)


def upvote_regressor(x, w1, b1, w2, b2, *, tile_b_cap=None,
                     block_bytes=4 * 1024 * 1024, x_buffers=None):
    """Forward pass of UpvoteRegressor: relu(x @ W1 + b1) @ W2 + b2.

    x : (B, D)
    w1: (D, 64), b1: (64,) or (1, 64), w2: (64, 1), b2: scalar / (1, 1)
    tile_b_cap : optional cap on the batch tile (testing / VMEM control).
    x_buffers  : optional pipeline depth for the x stream (e.g. 3 on v5e when
                 VMEM forces small blocks).
    """
    B, D = x.shape
    H = w1.shape[1]
    out_dtype = x.dtype
    itemsize = x.dtype.itemsize

    w2_row = w2.reshape(1, H).astype(jnp.float32)
    b2_s = jnp.asarray(b2, jnp.float32).reshape(1, 1)
    b1 = b1.reshape(1, H).astype(jnp.float32)

    # ---- Batch-tile sizing --------------------------------------------------
    # VMEM cost of one x block is tb * max(D, 128) * itemsize (rows lane-pad to
    # 128 when D < 128), double-buffered by the pipeline.  Target ~block_bytes
    # per block so per-grid-step overhead (~0.35 us) is amortized.
    # (For D << 128 one could further fold 128/D rows per lane row with a
    #  block-diagonal W1 to recover lane density; not needed at these sizes.)
    lane_w = max(D, 128)
    tb_budget = max(128, (block_bytes // (lane_w * itemsize)) // 128 * 128)
    # Keep >= 4 grid steps when B is large so ("parallel",) gives both v7x
    # TensorCores >= 2 steps each.
    tb_steps = max(128, _round_up(pl.cdiv(B, 4), 128))
    tb = min(tb_budget, tb_steps)
    if tile_b_cap is not None:
        tb = min(tb, max(128, _round_up(tile_b_cap, 128)))
    # Never larger than the sublane-rounded batch.  If this clamps, there is a
    # single grid step, so the (1, tb) output block still spans the full
    # output array (no multiple-of-128 requirement on tb in that case).
    tb = max(8, min(tb, _round_up(B, 8)))
    num_tiles = pl.cdiv(B, tb)

    x_spec_kwargs = {}
    if x_buffers is not None:
        x_spec_kwargs["pipeline_mode"] = pl.Buffered(x_buffers)
    x_spec = pl.BlockSpec((tb, D), lambda i: (i, 0), **x_spec_kwargs)

    cost = pl.CostEstimate(
        flops=2 * B * D * H + 4 * B * H,
        transcendentals=0,
        bytes_accessed=(B * D * itemsize                 # stream x
                        + B * 4                          # output
                        + D * H * w1.dtype.itemsize      # weights (resident)
                        + (2 * H + 1) * 4),              # biases + w2
    )

    out = pl.pallas_call(
        mlp_kernel,
        out_shape=jax.ShapeDtypeStruct((1, num_tiles * tb), out_dtype),
        grid=(num_tiles,),
        in_specs=[
            # x: streamed batch tiles (double-buffered by the pipeline).
            x_spec,
            # Weights / bias1 / w2: constant block index -> VMEM-resident.
            pl.BlockSpec((D, H), lambda i: (0, 0)),
            pl.BlockSpec((1, H), lambda i: (0, 0)),
            pl.BlockSpec((1, H), lambda i: (0, 0)),
            # bias2: scalar in SMEM.
            pl.BlockSpec((1, 1), lambda i: (0, 0),
                         memory_space=pltpu.MemorySpace.SMEM),
        ],
        # Lane-dense output: one (1, tb) row per grid step.
        out_specs=pl.BlockSpec((1, tb), lambda i: (0, i)),
        compiler_params=pltpu.CompilerParams(
            dimension_semantics=("parallel",),
            vmem_limit_bytes=32 * 1024 * 1024),
        cost_estimate=cost,
    )(x, w1, b1, w2_row, b2_s)

    # (1, num_tiles*tb) lane-major row -> (B, 1) column.  Garbage columns from
    # the ragged last x block (rows >= B) are discarded by the [:B] slice.
    return out.reshape(-1)[:B].reshape(B, 1)


def init_params(key, input_dim, hidden=64):
    """nn.Linear default init: U(-1/sqrt(fan_in), 1/sqrt(fan_in))."""
    k1, k2, k3, k4 = jax.random.split(key, 4)
    bound1 = 1.0 / jnp.sqrt(jnp.float32(input_dim))
    bound2 = 1.0 / jnp.sqrt(jnp.float32(hidden))
    w1 = jax.random.uniform(k1, (input_dim, hidden), jnp.float32, -bound1, bound1)
    b1 = jax.random.uniform(k2, (1, hidden), jnp.float32, -bound1, bound1)
    w2 = jax.random.uniform(k3, (hidden, 1), jnp.float32, -bound2, bound2)
    b2 = jax.random.uniform(k4, (1, 1), jnp.float32, -bound2, bound2)
    return w1, b1, w2, b2


def _reference(x, w1, b1, w2, b2):
    return jnp.maximum(x @ w1 + b1, 0.0) @ w2 + b2


if __name__ == "__main__":
    key = jax.random.PRNGKey(0)
    k_x1, k_x2, k_p = jax.random.split(key, 3)

    input_dim = 32
    w1, b1, w2, b2 = init_params(k_p, input_dim)

    # Case 1: tiny batch -> single (ragged) grid step, tb clamps to 8.
    x1 = jax.random.normal(k_x1, (8, input_dim), jnp.float32)
    out1 = jax.block_until_ready(upvote_regressor(x1, w1, b1, w2, b2))
    assert out1.shape == (8, 1)
    assert jnp.allclose(out1, _reference(x1, w1, b1, w2, b2),
                        atol=1e-4, rtol=1e-4)

    # Case 2: multi-step grid (3 steps of 128 rows) with a ragged last block.
    x2 = jax.random.normal(k_x2, (300, input_dim), jnp.float32)
    out2 = jax.block_until_ready(
        upvote_regressor(x2, w1, b1, w2, b2, tile_b_cap=128))
    assert out2.shape == (300, 1)
    assert jnp.allclose(out2, _reference(x2, w1, b1, w2, b2),
                        atol=1e-4, rtol=1e-4)

    print("KERNEL_OK")
</pallas_src>

<mosaic_0001>
module attributes {stable_mosaic.version = 11 : i64} {
  func.func @mlp_kernel(%arg0: i32, %arg1: memref<8x32xf32, #tpu.memory_space<vmem>>, %arg2: memref<32x64xf32, #tpu.memory_space<vmem>>, %arg3: memref<1x64xf32, #tpu.memory_space<vmem>>, %arg4: memref<1x64xf32, #tpu.memory_space<vmem>>, %arg5: memref<1x1xf32, #tpu.memory_space<smem>>, %arg6: memref<1x8xf32, #tpu.memory_space<vmem>>) attributes {dimension_semantics = [#tpu.dimension_semantics<parallel>], iteration_bounds = array<i64: 1>, scalar_prefetch = 0 : i64, scratch_operands = 0 : i64, tpu.core_type = #tpu.core_type<tc>, window_params = [{transform_indices = @transform_0, window_bounds = array<i64: 8, 32>}, {pipeline_mode = #tpu.pipeline_mode<synchronous>, transform_indices = @transform_1, window_bounds = array<i64: 32, 64>}, {pipeline_mode = #tpu.pipeline_mode<synchronous>, transform_indices = @transform_2, window_bounds = array<i64: 1, 64>}, {pipeline_mode = #tpu.pipeline_mode<synchronous>, transform_indices = @transform_3, window_bounds = array<i64: 1, 64>}, {transform_indices = @transform_4, window_bounds = array<i64: 1, 1>}, {transform_indices = @transform_5, window_bounds = array<i64: 1, 8>}]} {
    %c0 = arith.constant 0 : index
    %c0_0 = arith.constant 0 : index
    %0 = vector.load %arg1[%c0, %c0_0] : memref<8x32xf32, #tpu.memory_space<vmem>>, vector<8x32xf32>
    %c0_1 = arith.constant 0 : index
    %c0_2 = arith.constant 0 : index
    %1 = vector.load %arg2[%c0_1, %c0_2] : memref<32x64xf32, #tpu.memory_space<vmem>>, vector<32x64xf32>
    %cst = arith.constant dense<0.000000e+00> : vector<8x64xf32>
    %2 = tpu.matmul %0, %1, %cst {dimension_numbers = #tpu.dot_dimension_numbers<[1], [0], [0], [1], [0, 0, 1, 1], [], []>} : vector<8x32xf32>, vector<32x64xf32>, vector<8x64xf32> -> vector<8x64xf32>
    %c0_3 = arith.constant 0 : index
    %c0_4 = arith.constant 0 : index
    %3 = vector.load %arg3[%c0_3, %c0_4] : memref<1x64xf32, #tpu.memory_space<vmem>>, vector<1x64xf32>
    %4 = vector.broadcast %3 : vector<1x64xf32> to vector<8x64xf32>
    %5 = arith.addf %2, %4 : vector<8x64xf32>
    %cst_5 = arith.constant 0.000000e+00 : f32
    %6 = vector.broadcast %cst_5 : f32 to vector<8x64xf32>
    %7 = arith.maximumf %5, %6 : vector<8x64xf32>
    %c0_6 = arith.constant 0 : index
    %c0_7 = arith.constant 0 : index
    %8 = vector.load %arg4[%c0_6, %c0_7] : memref<1x64xf32, #tpu.memory_space<vmem>>, vector<1x64xf32>
    %cst_8 = arith.constant dense<0.000000e+00> : vector<1x8xf32>
    %9 = tpu.matmul %8, %7, %cst_8 {dimension_numbers = #tpu.dot_dimension_numbers<[1], [1], [0], [0], [0, 0, 1, 0], [], []>} : vector<1x64xf32>, vector<8x64xf32>, vector<1x8xf32> -> vector<1x8xf32>
    %c0_9 = arith.constant 0 : index
    %c0_10 = arith.constant 0 : index
    %10 = memref.load %arg5[%c0_9, %c0_10] : memref<1x1xf32, #tpu.memory_space<smem>>
    %11 = vector.broadcast %10 : f32 to vector<1x8xf32>
    %12 = arith.addf %9, %11 : vector<1x8xf32>
    %c0_11 = arith.constant 0 : index
    %c0_12 = arith.constant 0 : index
    %13 = vector.load %arg6[%c0_11, %c0_12] : memref<1x8xf32, #tpu.memory_space<vmem>>, vector<1x8xf32>
    tpu.vector_store %arg6[%c0_11, %c0_12], %12 {strides = array<i32>} : memref<1x8xf32, #tpu.memory_space<vmem>>, vector<1x8xf32>,
    return
  }
  func.func @transform_0(%arg0: i32) -> (i32, i32) {
    %c0_i32 = arith.constant 0 : i32
    %c0_i32_0 = arith.constant 0 : i32
    return %arg0, %c0_i32 : i32, i32
  }
  func.func @transform_1(%arg0: i32) -> (i32, i32) {
    %c0_i32 = arith.constant 0 : i32
    %c0_i32_0 = arith.constant 0 : i32
    %c0_i32_1 = arith.constant 0 : i32
    return %c0_i32, %c0_i32_0 : i32, i32
  }
  func.func @transform_2(%arg0: i32) -> (i32, i32) {
    %c0_i32 = arith.constant 0 : i32
    %c0_i32_0 = arith.constant 0 : i32
    %c0_i32_1 = arith.constant 0 : i32
    return %c0_i32, %c0_i32_0 : i32, i32
  }
  func.func @transform_3(%arg0: i32) -> (i32, i32) {
    %c0_i32 = arith.constant 0 : i32
    %c0_i32_0 = arith.constant 0 : i32
    %c0_i32_1 = arith.constant 0 : i32
    return %c0_i32, %c0_i32_0 : i32, i32
  }
  func.func @transform_4(%arg0: i32) -> (i32, i32) {
    %c0_i32 = arith.constant 0 : i32
    %c0_i32_0 = arith.constant 0 : i32
    %c0_i32_1 = arith.constant 0 : i32
    return %c0_i32, %c0_i32_0 : i32, i32
  }
  func.func @transform_5(%arg0: i32) -> (i32, i32) {
    %c0_i32 = arith.constant 0 : i32
    %c0_i32_0 = arith.constant 0 : i32
    return %c0_i32, %arg0 : i32, i32
  }
}

</mosaic_0001>

<bundles_post_ra>
// kernel: tpu_custom_call.1
= control target key start
LH: loop header
LB: loop body
LE: loop exit
PB: predicated region body
PF: predicated region fallthrough
CT: control target
= control target key end

     0   :  { %11 = vsyncpa [#allocation4], 0  ;;  %s276_s0 = inlined_call_operand.hbm [shape: f32[8,32], index: 0, kind: input, shape index: {}]   ;;  %s277_s1 = inlined_call_operand.hbm [shape: f32[32,64], index: 1, kind: input, shape index: {}]   ;;  %s278_s2 = inlined_call_operand.vmem [shape: f32[1,64], index: 2, kind: input, shape index: {}]   ;;  %s279_s3 = inlined_call_operand.vmem [shape: f32[1,64], index: 3, kind: input, shape index: {}]   ;;  %s280_s4 = inlined_call_operand.<no memory space> [shape: f32[1,1], index: 4, kind: input, shape index: {}]   ;;  %s281_s5 = inlined_call_operand.hbm [shape: f32[1,8], index: 5, kind: output, shape index: {}]  }
   0x1   :  { %12 = vsyncpa [#allocation7], 0 }
   0x2   :  { %13 = vsyncpa [#allocation5], 0  ;;  %s19_s20 = sshll.u32 %s276_s0, 4  ;;  %s223_s21 = smov [#allocation3]   ;;  %s20_s20 = int_to_ptr.hbm [resolvable:$true] %s19_s20 }
   0x3   :  { %s21_s22 = sshll.u32 %s223_s21, 4  ;;  %s29_s25 = sshll.u32 %s277_s1, 4  ;;  %s22_s22 = int_to_ptr.vmem [resolvable:$true] %s21_s22  ;;  %s30_s25 = int_to_ptr.hbm [resolvable:$true] %s29_s25 }
   0x4   :  { %24 = dma.hbm_to_vmem [thread:$0]  %s20_s20, 128, %s22_s22, [#allocation4]  }
   0x5   :  { %s224_s26 = smov [#allocation6]   ;;  %s225_s28 = smov 128  }
   0x6   :  { %s31_s27 = sshll.u32 %s224_s26, 4  ;;  %s226_s29 = smov 8   ;;  %s32_s27 = int_to_ptr.vmem [resolvable:$true] %s31_s27 }
   0x7   :  { %37 = dma.hbm_to_vmem [thread:$0]  %s30_s25, 512, %s32_s27, [#allocation7], %s225_s28, %s225_s28, %s226_s29  }
   0x8   :  { %217 = dma.done.wait [#allocation4], 128  }
   0x9   :  { %218 = vsyncadd [#allocation4], 4294967168 }
   0xa   :  { %219 = dma.done.wait [#allocation7], 512  }
   0xb   :  { %220 = vsyncadd [#allocation7], 4294966784  ;;  %v56_v0 = vld [vmem:[#allocation6 + $0x18] sm:$0xff]  ;;  %v55_v1 = vld [vmem:[#allocation6 + $0x10] sm:$0xff]  ;;  %vm61_vm0 = vcmask 261120   ;;  %vm89_vm1 = vcmask 523264   ;;  %v88_v10 = vstv %s280_s4 }
   0xc   :  { %77 = vmatpush.msra.mxu0 %v56_v0  ;;  %v54_v2 = vld [vmem:[#allocation6 + $0x8] sm:$0xff]  ;;  %v53_v3 = vld [vmem:[#allocation6] sm:$0xff]  ;;  %v52_v4 = vld [vmem:[#allocation3] sm:$0xff]  ;;  %s227_s9 = smov [#allocation8]   ;;  %vm116_vm2 = vcmask 57344  }
   0xd   :  { %v144_v5 = vld [vmem:[%s278_s2] ss:$0 sm:$0xff]  ;;  %s123_s10 = sshll.u32 %s227_s9, 4  ;;  %s125_s2 = sshll.u32 %s281_s5, 4  ;;  %s124_s10 = int_to_ptr.vmem [resolvable:$true] %s123_s10  ;;  %s126_s2 = int_to_ptr.hbm [resolvable:$true] %s125_s2 }
   0xe   :  { %78 = vmatpush.msra.mxu0 %v55_v1  ;;  %v86_v9 = vld [vmem:[%s279_s3] sm:$0x1] }
  0x10   :  { %79 = vmatpush.msra.mxu0 %v54_v2 }
  0x12   :  { %80 = vmatpush.msra.mxu0 %v53_v3 }
  0x13   :  { %136 = vmatmul.msk.f32.vlgmr.msra.gmra.mxu0 %vm61_vm0, %v52_v4 }
  0x90   :  { %v82_v6 = vpop.f32.mrf.mxu0 }
  0x91   :  { %v83_v7 = vadd.f32 %v144_v5, %v82_v6 }
  0x93   :  { %v85_v8 = vmax.f32 %v83_v7, 0.0 }
  0x95   :  { %137 = vmatpush.xpose.msk.msra.mxu1 %vm89_vm1, %v85_v8 }
  0x98   :  { %138 = vmatmul.msk.f32.vlgmr.msra.gmra.mxu1 %vm89_vm1, %v86_v9 }
 0x115   :  { %v113_v11 = vpop.f32.mrf.mxu1 }
 0x116   :  { %v114_v12 = vadd.f32 %v113_v11, %v88_v10 }
 0x118   :  { %117 = vst.msk [vmem:[#allocation8] sm:$0x1] %vm116_vm2, %v114_v12 }
 0x119   :  { %128 = dma.vmem_to_hbm [thread:$0]  %s124_s10, 16, %s126_s2, [#allocation5]  }
 0x11a   :  { %221 = dma.done.wait [#allocation5], 16  }
 0x11b   :  { %222 = vsyncadd [#allocation5], 4294967280 }
 0x11c   :  { %133 = vsyncpa [#allocation4], 1 }
 0x11d   :  { %134 = vsyncpa [#allocation7], 1 }
 0x11e   :  { %135 = vsyncpa [#allocation5], 1 }

</bundles_post_ra>
